<compile_context>
chip_gen: v7x
topology: tpu7x:2x2x1
jax: 0.10.0
libtpu: 0.0.40
codegen_flags: <defaults>
</compile_context>

<pallas_src>
import functools

import jax
import jax.numpy as jnp
from jax.experimental import pallas as pl
from jax.experimental.pallas import tpu as pltpu


# ---------------------------------------------------------------------------
# Kernel 1: fused projection for all heads.
#   z  = x @ W_flat                      (one lane-dense (C_in, H*F) matmul)
#   el = z @ blockdiag(a_l), er = z @ blockdiag(a_r)
# ---------------------------------------------------------------------------
def _gat_proj_kernel(x_ref, w_ref, al_ref, ar_ref, z_ref, el_ref, er_ref):
    x = x_ref[...]                                                   # (T, C_in) bf16
    z = jnp.dot(x, w_ref[...], preferred_element_type=jnp.float32)  # (T, H*F) f32
    z_bf = z.astype(jnp.bfloat16)
    z_ref[...] = z_bf
    el_ref[...] = jnp.dot(z_bf, al_ref[...], preferred_element_type=jnp.float32)
    er_ref[...] = jnp.dot(z_bf, ar_ref[...], preferred_element_type=jnp.float32)


# ---------------------------------------------------------------------------
# Kernel 2: head-fused, source-tiled masked edge-softmax + aggregation.
# One grid step = (destination row tile i, source tile k); k is innermost.
# Online softmax state (m, l, acc) lives in VMEM scratch per row tile.
# ---------------------------------------------------------------------------
def _gat_attn_kernel(blk_ref, z_ref, el_ref, er_ref, adj_ref, b_ref, out_ref,
                     m_scr, l_scr, acc_scr, *, negative_slope):
    # blk_ref:  (nI, nK)   int32 SMEM   per-block "has any edge" table
    # z_ref:    (TK, H*F)  bf16         projected source features, tile k
    # el_ref:   (H, TK)    f32          source scores, tile k (head-major rows)
    # er_ref:   (TI, H)    f32          destination scores, row tile i
    # adj_ref:  (TI, TK)   int8         adjacency (1 iff edge j -> i)
    # b_ref:    (1, H*F)   f32          bias (flattened head-major)
    # out_ref:  (TI, H*F)  f32          lane-dense output block
    # m_scr/l_scr: (H, TI, 1) f32 ; acc_scr: (H, TI, F) f32
    i = pl.program_id(0)
    k = pl.program_id(1)
    nk = pl.num_programs(1)
    num_heads = el_ref.shape[0]
    out_feats = acc_scr.shape[-1]

    @pl.when(k == 0)
    def _init():
        m_scr[...] = jnp.full(m_scr.shape, -jnp.inf, dtype=m_scr.dtype)
        l_scr[...] = jnp.zeros(l_scr.shape, dtype=l_scr.dtype)
        acc_scr[...] = jnp.zeros(acc_scr.shape, dtype=acc_scr.dtype)

    @pl.when(blk_ref[i, k] > 0)            # skip compute on edge-free blocks
    def _compute():
        mask = adj_ref[...] > 0            # (TI, TK) bool, shared by all heads
        el = el_ref[...]                   # (H, TK)
        er = er_ref[...]                   # (TI, H)
        z_tile = z_ref[...]                # (TK, H*F) bf16
        for h in range(num_heads):         # static unroll, H small
            e = er[:, h:h + 1] + el[h:h + 1, :]             # (TI, TK)
            e = jnp.where(e >= 0, e, negative_slope * e)    # LeakyReLU (any slope)
            e = jnp.where(mask, e, -1e30)                   # mask non-edges
            m_prev = m_scr[h]                               # (TI, 1)
            m_new = jnp.maximum(m_prev, jnp.max(e, axis=-1, keepdims=True))
            scale = jnp.exp(m_prev - m_new)
            p = jnp.exp(e - m_new)
            l_scr[h] = scale * l_scr[h] + jnp.sum(p, axis=-1, keepdims=True)
            acc_scr[h] = scale * acc_scr[h] + jnp.dot(
                p.astype(jnp.bfloat16),
                z_tile[:, h * out_feats:(h + 1) * out_feats],
                preferred_element_type=jnp.float32)
            m_scr[h] = m_new

    @pl.when(k == nk - 1)
    def _finalize():
        cols = []
        for h in range(num_heads):
            inv = pl.reciprocal(jnp.maximum(l_scr[h], 1e-30), approx=True)
            cols.append(acc_scr[h] * inv)
        # single lane-dense (TI, H*F) store
        out_ref[...] = (jnp.concatenate(cols, axis=-1)
                        + b_ref[...]).astype(out_ref.dtype)


def graph_attention_layer(x, adj, w, attn_l, attn_r, bias, *, agg="mean",
                          negative_slope=0.2, tile=128):
    """x: (N, C_in), adj: (N, N) with adj[i, j] = 1 iff edge j -> i,
    w: (H, C_in, F), attn_l/attn_r: (H, F, 1), bias: (H, 1, F).
    Returns (N, F) for agg in {'mean','sum'}, else (N, H, F)."""
    n, c_in = x.shape
    num_heads, _, out_feats = w.shape
    hf = num_heads * out_feats

    # Pad node count to a multiple of the tile; padded nodes get no edges and
    # their rows are sliced off at the end.
    n_pad = ((n + tile - 1) // tile) * tile
    pad = n_pad - n
    x_p = jnp.pad(x, ((0, pad), (0, 0)))
    adj_p = jnp.pad(adj, ((0, pad), (0, pad)))

    # ---- wrapper-side layout plumbing (cheap, one-time) ----
    w_flat = jnp.transpose(w, (1, 0, 2)).reshape(c_in, hf).astype(jnp.bfloat16)
    eye = jnp.eye(num_heads, dtype=jnp.float32)
    al_mat = (attn_l[..., 0][:, :, None] * eye[:, None, :]).reshape(hf, num_heads)
    ar_mat = (attn_r[..., 0][:, :, None] * eye[:, None, :]).reshape(hf, num_heads)
    al_mat = al_mat.astype(jnp.bfloat16)
    ar_mat = ar_mat.astype(jnp.bfloat16)
    bias_flat = bias.reshape(1, hf).astype(jnp.float32)
    # int8 adjacency stream (half the HBM traffic of the old bf16 mask);
    # TODO(synk): bit-pack to uint32 for another 8x on HBM-poor v5e.
    adj_i8 = (adj_p > 0).astype(jnp.int8)

    n_i = n_pad // tile
    n_k = n_pad // tile
    # per-(row tile, source tile) "has any edge" table -> scalar prefetch
    blk_any = (adj_p.reshape(n_i, tile, n_k, tile).sum(axis=(1, 3)) > 0
               ).astype(jnp.int32)

    # ---- kernel 1: fused projection (all heads at once) ----
    z_flat, el_flat, er_flat = pl.pallas_call(
        _gat_proj_kernel,
        out_shape=(
            jax.ShapeDtypeStruct((n_pad, hf), jnp.bfloat16),
            jax.ShapeDtypeStruct((n_pad, num_heads), jnp.float32),
            jax.ShapeDtypeStruct((n_pad, num_heads), jnp.float32),
        ),
        grid_spec=pltpu.PrefetchScalarGridSpec(
            num_scalar_prefetch=0,
            grid=(n_pad // tile,),
            in_specs=[
                pl.BlockSpec((tile, c_in), lambda i: (i, 0)),       # x rows
                pl.BlockSpec((c_in, hf), lambda i: (0, 0)),         # W_flat
                pl.BlockSpec((hf, num_heads), lambda i: (0, 0)),    # a_l block-diag
                pl.BlockSpec((hf, num_heads), lambda i: (0, 0)),    # a_r block-diag
            ],
            out_specs=(
                pl.BlockSpec((tile, hf), lambda i: (i, 0)),
                pl.BlockSpec((tile, num_heads), lambda i: (i, 0)),
                pl.BlockSpec((tile, num_heads), lambda i: (i, 0)),
            ),
        ),
        compiler_params=pltpu.CompilerParams(
            dimension_semantics=("parallel",)),
    )(x_p.astype(jnp.bfloat16), w_flat, al_mat, ar_mat)

    # tiny (H, N) transpose of the source scores so kernel 2 can slice
    # lane-dense rows per head (N*H*4 bytes, negligible vs. the adj stream)
    el_t = el_flat.T

    kernel = functools.partial(_gat_attn_kernel,
                               negative_slope=float(negative_slope))

    # ---- kernel 2: head-fused online-softmax attention + aggregation ----
    out_flat = pl.pallas_call(
        kernel,
        out_shape=jax.ShapeDtypeStruct((n_pad, hf), jnp.float32),
        grid_spec=pltpu.PrefetchScalarGridSpec(
            num_scalar_prefetch=1,                  # blk_any -> SMEM
            grid=(n_i, n_k),                        # source tiles innermost
            in_specs=[
                pl.BlockSpec((tile, hf), lambda i, k, blk: (k, 0)),         # z src tile
                pl.BlockSpec((num_heads, tile), lambda i, k, blk: (0, k)),  # el src tile
                pl.BlockSpec((tile, num_heads), lambda i, k, blk: (i, 0)),  # er dst tile
                pl.BlockSpec((tile, tile), lambda i, k, blk: (i, k)),       # adj int8
                pl.BlockSpec((1, hf), lambda i, k, blk: (0, 0)),            # bias
            ],
            out_specs=pl.BlockSpec((tile, hf), lambda i, k, blk: (i, 0)),
            scratch_shapes=[
                pltpu.VMEM((num_heads, tile, 1), jnp.float32),          # running max
                pltpu.VMEM((num_heads, tile, 1), jnp.float32),          # running denom
                pltpu.VMEM((num_heads, tile, out_feats), jnp.float32),  # accumulator
            ]),
        compiler_params=pltpu.CompilerParams(
            dimension_semantics=("parallel", "arbitrary"),
            vmem_limit_bytes=48 * 1024 * 1024),     # fits v7x's 64 MiB with headroom
    )(blk_any, z_flat, el_t, er_flat, adj_i8, bias_flat)

    heads_out = out_flat[:n].reshape(n, num_heads, out_feats)
    if agg == "mean":
        return heads_out.mean(axis=1).astype(x.dtype)
    if agg == "sum":
        return heads_out.sum(axis=1).astype(x.dtype)
    # agg=None -> per-head output (N, H, F), matching GATConv's layout.
    return heads_out.astype(x.dtype)


def _reference(x, adj, w, attn_l, attn_r, bias, negative_slope=0.2, agg="mean"):
    """Pure-JAX f32 reference for correctness checking."""
    z = jnp.einsum("nc,hcf->nhf", x, w)                              # (N, H, F)
    el = jnp.einsum("nhf,hf->nh", z, attn_l[..., 0])                 # (N, H) src
    er = jnp.einsum("nhf,hf->nh", z, attn_r[..., 0])                 # (N, H) dst
    e = er[:, None, :] + el[None, :, :]                              # (dst, src, H)
    e = jnp.where(e > 0, e, negative_slope * e)
    e = jnp.where(adj[:, :, None] > 0, e, -1e30)
    alpha = jax.nn.softmax(e, axis=1)                                # over src
    rst = jnp.einsum("ijh,jhf->ihf", alpha, z) + bias.reshape(1, -1, bias.shape[-1])
    if agg == "mean":
        return rst.mean(axis=1)
    if agg == "sum":
        return rst.sum(axis=1)
    return rst


if __name__ == "__main__":
    # Small deterministic problem: N=256 nodes, C_in=8, out=32, heads=4 (H*F=128).
    N, C_IN, OUT, HEADS = 256, 8, 32, 4
    key = jax.random.PRNGKey(0)
    kx, kadj, kw, kal, kar, kb = jax.random.split(key, 6)

    x = jax.random.normal(kx, (N, C_IN), dtype=jnp.float32)

    # Random sparse directed graph + self-loops (>= 1 in-edge per node).
    adj = (jax.random.uniform(kadj, (N, N)) < 0.05).astype(jnp.float32)
    adj = jnp.maximum(adj, jnp.eye(N, dtype=jnp.float32))

    scale = 1.0 / jnp.sqrt(C_IN)
    w = jax.random.normal(kw, (HEADS, C_IN, OUT), dtype=jnp.float32) * scale
    attn_l = jax.random.normal(kal, (HEADS, OUT, 1), dtype=jnp.float32) * 0.1
    attn_r = jax.random.normal(kar, (HEADS, OUT, 1), dtype=jnp.float32) * 0.1
    bias = jax.random.normal(kb, (HEADS, 1, OUT), dtype=jnp.float32) * 0.01

    out = graph_attention_layer(x, adj, w, attn_l, attn_r, bias, agg="mean")
    out = jax.block_until_ready(out)

    ref = _reference(x, adj, w, attn_l, attn_r, bias, agg="mean")
    assert out.shape == (N, OUT)
    # bf16 MXU operands (z, alpha, W) -> tolerance loosened vs the f32 reference.
    max_err = jnp.max(jnp.abs(out - ref))
    assert jnp.allclose(out, ref, atol=4e-2, rtol=4e-2), (
        f"mismatch vs reference (max abs err {max_err})")

    print("KERNEL_OK")
</pallas_src>

<mosaic_0001>
module attributes {stable_mosaic.version = 11 : i64} {
  func.func @_gat_proj_kernel(%arg0: i32, %arg1: memref<128x8xbf16, #tpu.memory_space<vmem>>, %arg2: memref<8x128xbf16, #tpu.memory_space<vmem>>, %arg3: memref<128x4xbf16, #tpu.memory_space<vmem>>, %arg4: memref<128x4xbf16, #tpu.memory_space<vmem>>, %arg5: memref<128x128xbf16, #tpu.memory_space<vmem>>, %arg6: memref<128x4xf32, #tpu.memory_space<vmem>>, %arg7: memref<128x4xf32, #tpu.memory_space<vmem>>) attributes {dimension_semantics = [#tpu.dimension_semantics<parallel>], iteration_bounds = array<i64: 2>, scalar_prefetch = 0 : i64, scratch_operands = 0 : i64, tpu.core_type = #tpu.core_type<tc>, window_params = [{transform_indices = @transform_0, window_bounds = array<i64: 128, 8>}, {pipeline_mode = #tpu.pipeline_mode<synchronous>, transform_indices = @transform_1, window_bounds = array<i64: 8, 128>}, {pipeline_mode = #tpu.pipeline_mode<synchronous>, transform_indices = @transform_2, window_bounds = array<i64: 128, 4>}, {pipeline_mode = #tpu.pipeline_mode<synchronous>, transform_indices = @transform_3, window_bounds = array<i64: 128, 4>}, {transform_indices = @transform_4, window_bounds = array<i64: 128, 128>}, {transform_indices = @transform_5, window_bounds = array<i64: 128, 4>}, {transform_indices = @transform_6, window_bounds = array<i64: 128, 4>}]} {
    %c0 = arith.constant 0 : index
    %c0_0 = arith.constant 0 : index
    %0 = vector.load %arg1[%c0, %c0_0] : memref<128x8xbf16, #tpu.memory_space<vmem>>, vector<128x8xbf16>
    %c0_1 = arith.constant 0 : index
    %c0_2 = arith.constant 0 : index
    %1 = vector.load %arg2[%c0_1, %c0_2] : memref<8x128xbf16, #tpu.memory_space<vmem>>, vector<8x128xbf16>
    %cst = arith.constant dense<0.000000e+00> : vector<128x128xf32>
    %2 = tpu.matmul %0, %1, %cst {dimension_numbers = #tpu.dot_dimension_numbers<[1], [0], [0], [1], [0, 0, 1, 1], [], []>} : vector<128x8xbf16>, vector<8x128xbf16>, vector<128x128xf32> -> vector<128x128xf32>
    %3 = arith.truncf %2 : vector<128x128xf32> to vector<128x128xbf16>
    %c0_3 = arith.constant 0 : index
    %c0_4 = arith.constant 0 : index
    %4 = vector.load %arg5[%c0_3, %c0_4] : memref<128x128xbf16, #tpu.memory_space<vmem>>, vector<128x128xbf16>
    tpu.vector_store %arg5[%c0_3, %c0_4], %3 {strides = array<i32>} : memref<128x128xbf16, #tpu.memory_space<vmem>>, vector<128x128xbf16>,
    %c0_5 = arith.constant 0 : index
    %c0_6 = arith.constant 0 : index
    %5 = vector.load %arg3[%c0_5, %c0_6] : memref<128x4xbf16, #tpu.memory_space<vmem>>, vector<128x4xbf16>
    %cst_7 = arith.constant dense<0.000000e+00> : vector<128x4xf32>
    %6 = tpu.matmul %3, %5, %cst_7 {dimension_numbers = #tpu.dot_dimension_numbers<[1], [0], [0], [1], [0, 0, 1, 1], [], []>} : vector<128x128xbf16>, vector<128x4xbf16>, vector<128x4xf32> -> vector<128x4xf32>
    %c0_8 = arith.constant 0 : index
    %c0_9 = arith.constant 0 : index
    %7 = vector.load %arg6[%c0_8, %c0_9] : memref<128x4xf32, #tpu.memory_space<vmem>>, vector<128x4xf32>
    tpu.vector_store %arg6[%c0_8, %c0_9], %6 {strides = array<i32>} : memref<128x4xf32, #tpu.memory_space<vmem>>, vector<128x4xf32>,
    %c0_10 = arith.constant 0 : index
    %c0_11 = arith.constant 0 : index
    %8 = vector.load %arg4[%c0_10, %c0_11] : memref<128x4xbf16, #tpu.memory_space<vmem>>, vector<128x4xbf16>
    %cst_12 = arith.constant dense<0.000000e+00> : vector<128x4xf32>
    %9 = tpu.matmul %3, %8, %cst_12 {dimension_numbers = #tpu.dot_dimension_numbers<[1], [0], [0], [1], [0, 0, 1, 1], [], []>} : vector<128x128xbf16>, vector<128x4xbf16>, vector<128x4xf32> -> vector<128x4xf32>
    %c0_13 = arith.constant 0 : index
    %c0_14 = arith.constant 0 : index
    %10 = vector.load %arg7[%c0_13, %c0_14] : memref<128x4xf32, #tpu.memory_space<vmem>>, vector<128x4xf32>
    tpu.vector_store %arg7[%c0_13, %c0_14], %9 {strides = array<i32>} : memref<128x4xf32, #tpu.memory_space<vmem>>, vector<128x4xf32>,
    return
  }
  func.func @transform_0(%arg0: i32) -> (i32, i32) {
    %c0_i32 = arith.constant 0 : i32
    %c0_i32_0 = arith.constant 0 : i32
    return %arg0, %c0_i32 : i32, i32
  }
  func.func @transform_1(%arg0: i32) -> (i32, i32) {
    %c0_i32 = arith.constant 0 : i32
    %c0_i32_0 = arith.constant 0 : i32
    %c0_i32_1 = arith.constant 0 : i32
    return %c0_i32, %c0_i32_0 : i32, i32
  }
  func.func @transform_2(%arg0: i32) -> (i32, i32) {
    %c0_i32 = arith.constant 0 : i32
    %c0_i32_0 = arith.constant 0 : i32
    %c0_i32_1 = arith.constant 0 : i32
    return %c0_i32, %c0_i32_0 : i32, i32
  }
  func.func @transform_3(%arg0: i32) -> (i32, i32) {
    %c0_i32 = arith.constant 0 : i32
    %c0_i32_0 = arith.constant 0 : i32
    %c0_i32_1 = arith.constant 0 : i32
    return %c0_i32, %c0_i32_0 : i32, i32
  }
  func.func @transform_4(%arg0: i32) -> (i32, i32) {
    %c0_i32 = arith.constant 0 : i32
    %c0_i32_0 = arith.constant 0 : i32
    return %arg0, %c0_i32 : i32, i32
  }
  func.func @transform_5(%arg0: i32) -> (i32, i32) {
    %c0_i32 = arith.constant 0 : i32
    %c0_i32_0 = arith.constant 0 : i32
    return %arg0, %c0_i32 : i32, i32
  }
  func.func @transform_6(%arg0: i32) -> (i32, i32) {
    %c0_i32 = arith.constant 0 : i32
    %c0_i32_0 = arith.constant 0 : i32
    return %arg0, %c0_i32 : i32, i32
  }
}

</mosaic_0001>

<bundles_post_ra>
// kernel: tpu_custom_call.1
= control target key start
LH: loop header
LB: loop body
LE: loop exit
PB: predicated region body
PF: predicated region fallthrough
CT: control target
= control target key end

     0   :  { %12 = vsyncpa [#allocation3], 0  ;;  %s1726_s0 = inlined_call_operand.vmem [shape: bf16[256,8], index: 0, kind: input, shape index: {}]   ;;  %s1727_s1 = inlined_call_operand.vmem [shape: bf16[8,128], index: 1, kind: input, shape index: {}]   ;;  %s1728_s2 = inlined_call_operand.vmem [shape: bf16[128,4], index: 2, kind: input, shape index: {}]   ;;  %s1729_s3 = inlined_call_operand.vmem [shape: bf16[128,4], index: 3, kind: input, shape index: {}]   ;;  %s1730_s4 = inlined_call_operand.hbm [shape: bf16[256,128], index: 4, kind: output, shape index: {0}]   ;;  %s1731_s5 = inlined_call_operand.vmem [shape: f32[256,4], index: 5, kind: output, shape index: {1}]   ;;  %s1732_s6 = inlined_call_operand.vmem [shape: f32[256,4], index: 6, kind: output, shape index: {2}]  }
   0x1   :  { %14 = vsyncpa [#allocation3 + $0x1], 0  ;;  %s1462_s21 = smov 0   ;;  %s1464_s22 = smov 0  }
   0x2   :  { %s1466_s23 = smov 0   ;;  %s1468_s24 = smov 0  }
   0x3 LB: > { %s1483_s25 = sadd.s32 4294967295, %s1422_s24   ;;  %s1043_s26 = sadd.s32 4294967294, %s1422_s24   ;;  %s1422_s24 = sphi %s1468_s24, %s1738_s24   ;;  %s1418_s23 = sphi %s1466_s23, %s1737_s23   ;;  %s1414_s22 = sphi %s1464_s22, %s1736_s22   ;;  %s1410_s21 = sphi %s1462_s21, %s1735_s21  }
   0x4   : > { %s1487_s27 = sadd.s32 1, %s1422_s24   ;;  %s116_s28 = sadd.s32 1, %s1418_s23 }
   0x5   : > { %s113_s29 = ssub.s32 %s1422_s24, %s1487_s27  ;;  %p126_p0 = scmp.ne.s32.totalorder %s1418_s23, %s1414_s22 }
   0x6   : > { %p114_p1 = scmp.eq.s32.totalorder %s113_s29, 0  ;;  %p127_p2 = scmp.eq.s32.totalorder %s1483_s25, 1 }
   0x7   : > { %p132_p3 = scmp.ne.s32.totalorder %s1414_s22, %s1410_s21  ;;  %p133_p4 = scmp.eq.s32.totalorder %s1043_s26, 1 }
   0x8   : > { %s1498_s30 = scalar_select %p114_p1, %s1418_s23, %s116_s28  }
   0x9   : > { %p1500_p5 = por %p127_p2, %p126_p0  ;;  %p1504_p6 = por %p133_p4, %p132_p3 }
   0xa   : > { %p1046_p7 = scmp.ge.s32.totalorder %s1422_s24, 1  ;;  %p221_p8 = scmp.lt.s32.totalorder %s1422_s24, 3 }
   0xc   : > { %p222_p9 = pnand %p1046_p7, %p221_p8 }
   0xd   : > { %v297_v0 = vld [vmem:[%s1727_s1] sm:$0xf] (!%p222_p9)  ;;  %vm363_vm0 = vcmask (!%p222_p9), 1043456   ;;  %s1048_s11 = sshll.u32 (!%p222_p9), %s1483_s25, 4  ;;  %v1347_v4 = vld [vmem:[%s1728_s2 + $0x8] sm:$0xff] (!%p222_p9)   ;;  %vm338_vm1 = vcmask (!%p222_p9), 64512  }
   0xe   : > { %225 = sbr.rel (%p222_p9) target bundleno = 484 (0x1e4), region = 36  ;;  %v1344_v1 = vld [vmem:[%s1729_s3] sm:$0xff] (!%p222_p9)   ;;  %1294 = vmatprep.subr.msk.bf16.mxu0 (!%p222_p9), %vm363_vm0, %v297_v0  ;;  %v365_v2 = vsel (!%p222_p9), %vm363_vm0, %v297_v0, 0  ;;  %p262_p10 = scmp.lt.s32.totalorder (!%p222_p9), %s1048_s11, 31  ;;  %v1346_v5 = vld [vmem:[%s1729_s3 + $0x8] sm:$0xff] (!%p222_p9)   ;;  %v1349_v6 = vld [vmem:[%s1728_s2 + $0x10] sm:$0xff] (!%p222_p9)  }
   0xf   : > { %1213 = vmatpush3.bf16.msra.mxu0 (!%p222_p9), %v365_v2  ;;  %v1345_v3 = vld [vmem:[%s1728_s2] sm:$0xff] (!%p222_p9)   ;;  %v1348_v10 = vld [vmem:[%s1729_s3 + $0x10] sm:$0xff] (!%p222_p9)   ;;  %v1350_v13 = vld [vmem:[%s1729_s3 + $0x18] sm:$0xff] (!%p222_p9)   ;;  %s244_s28 = sand.u32 (!%p222_p9), 1, %s1414_s22   ;;  %s1123_s9 = sshll.u32 (!%p222_p9), %s1483_s25, 10 }
  0x10   : > { %1262 = vmatprep.subr.bf16.mxu0 (!%p222_p9), %v1344_v1  ;;  %1230 = vmatprep.subr.bf16.mxu1 (!%p222_p9), %v1345_v3  ;;  %v1351_v14 = vld [vmem:[%s1728_s2 + $0x18] sm:$0xff] (!%p222_p9)   ;;  %v1353_v15 = vld [vmem:[%s1728_s2 + $0x20] sm:$0xff] (!%p222_p9)   ;;  %v1355_v18 = vld [vmem:[%s1728_s2 + $0x28] sm:$0xff] (!%p222_p9)   ;;  %s1604_s14 = scalar_lea.hbm (!%p222_p9), %s1730_s4, %s1123_s9  ;;  %s1610_s15 = scalar_lea.sflag (!%p222_p9), [#allocation3], %s244_s28 }
  0x11   : > { %1231 = vmatpush3.bf16.msra.mxu1 (!%p222_p9), %v1345_v3  ;;  %v1352_v17 = vld [vmem:[%s1729_s3 + $0x20] sm:$0xff] (!%p222_p9)   ;;  %v1354_v20 = vld [vmem:[%s1729_s3 + $0x28] sm:$0xff] (!%p222_p9)   ;;  %v1357_v21 = vld [vmem:[%s1728_s2 + $0x30] sm:$0xff] (!%p222_p9)   ;;  %s1424_s25 = smov (!%p222_p9), [#allocation2]  }
  0x12   : > { %1232 = vmatprep.subr.bf16.mxu1 (!%p222_p9), %v1347_v4  ;;  %v1356_v22 = vld [vmem:[%s1729_s3 + $0x30] sm:$0xff] (!%p222_p9)   ;;  %v1358_v24 = vld [vmem:[%s1729_s3 + $0x38] sm:$0xff] (!%p222_p9)   ;;  %s1364_s17 = sshll.u32 (!%p222_p9), %s1424_s25, 4  ;;  %s1365_s17 = int_to_ptr.vmem [resolvable:$false] %s1364_s17 }
  0x13   : > { %v1359_v25 = vld [vmem:[%s1728_s2 + $0x38] sm:$0xff] (!%p222_p9)  }
  0x15   : > { %s1740_s11 = smov (!%p262_p10, %s1048_s11), 31  ;;  %1233 = vmatpush3.bf16.msra.mxu1 %v1347_v4 }
  0x16   : > { %s1049_s18 = sshll.u32 %s1740_s11, 2  ;;  %1234 = vmatprep.subr.bf16.mxu1 %v1349_v6 }
  0x17   : > { %s1529_s26 = scalar_lea.vmem %s1726_s0, %s1049_s18  ;;  %s1366_s18 = scalar_lea.vmem %s1365_s17, 2048 }
  0x18   : > { %v1336_v7 = vld [vmem:[%s1529_s26] sm:$0xff]   ;;  %v1337_v8 = vld [vmem:[%s1529_s26 + $0x8] sm:$0xff]   ;;  %v1338_v9 = vld [vmem:[%s1529_s26 + $0x10] sm:$0xff]  }
  0x19   : > { %1214 = vmatprep.mubr.msk.bf16.mxu0 %vm338_vm1, %v1336_v7  ;;  %v1339_v11 = vld [vmem:[%s1529_s26 + $0x18] sm:$0xff]   ;;  %1235 = vmatpush3.bf16.msra.mxu1 %v1349_v6  ;;  %v1340_v12 = vld [vmem:[%s1529_s26 + $0x20] sm:$0xff]   ;;  %v1341_v16 = vld [vmem:[%s1529_s26 + $0x28] sm:$0xff]  }
  0x1a   : > { %1215 = vmatmul.mubr.msk.bf16.vlgmr.msra.gmra.mrb[0].mxu0 %vm338_vm1, %v1337_v8  ;;  %1236 = vmatprep.subr.bf16.mxu1 %v1351_v14  ;;  %v1342_v19 = vld [vmem:[%s1529_s26 + $0x30] sm:$0xff]   ;;  %v1343_v23 = vld [vmem:[%s1529_s26 + $0x38] sm:$0xff]   ;;  %s1047_s26 = sshll.u32 %s244_s28, 6 }
  0x1b   : > { %1218 = vmatprep.mubr.msk.bf16.mxu0 %vm338_vm1, %v1338_v9  ;;  %1263 = vmatpush3.bf16.msra.mxu0 %v1344_v1  ;;  %s1589_s29 = scalar_lea.vmem [#allocation2], %s1047_s26 }
  0x1c   : > { %1264 = vmatprep.subr.bf16.mxu0 %v1346_v5  ;;  %s923_s10 = sshll.u32 %s1589_s29, 4  ;;  %s1606_s10 = int_to_ptr.vmem [resolvable:$true] %s923_s10 }
  0x1d   : > { %1237 = vmatpush3.bf16.msra.mxu1 %v1351_v14  ;;  %s1360_s16 = scalar_lea.vmem %s1606_s10, 1024  ;;  %p1367_p0 = scmp.lt.s32.totalorder %s1606_s10, %s1365_s17 }
  0x1e   : > { %1238 = vmatprep.subr.bf16.mxu1 %v1353_v15  ;;  %p1361_p11 = scmp.ne.s32.totalorder %s1606_s10, %s1360_s16  ;;  %p1368_p1 = scmp.lt.s32.totalorder %s1366_s18, %s1360_s16 }
  0x1f   : > { %1265 = vmatpush3.bf16.msra.mxu0 %v1346_v5 }
  0x20   : > { %1266 = vmatprep.subr.bf16.mxu0 %v1348_v10  ;;  %p1362_p12 = pnand %p1361_p11, %p1500_p5  ;;  %p1369_p2 = por %p1368_p1, %p1367_p0 }
  0x21   : > { %1239 = vmatpush3.bf16.msra.mxu1 %v1353_v15 }
  0x22   : > { %1219 = vmatmul.mubr.msk.bf16.gmra.mrb[4].mxu0 %vm338_vm1, %v1339_v11  ;;  %1240 = vmatprep.subr.bf16.mxu1 %v1355_v18  ;;  %p1363_p13 = pneg %p1362_p12 }
  0x23   : > { %1222 = vmatprep.mubr.msk.bf16.mxu0 %vm338_vm1, %v1340_v12  ;;  %1267 = vmatpush3.bf16.msra.mxu0 %v1348_v10 }
  0x24   : > { %1268 = vmatprep.subr.bf16.mxu0 %v1350_v13  ;;  %p1370_p3 = pnand %p1369_p2, %p1363_p13 }
  0x25   : > { %1241 = vmatpush3.bf16.msra.mxu1 %v1355_v18 }
  0x26   : > { %1242 = vmatprep.subr.bf16.mxu1 %v1357_v21 }
  0x27   : > { %1269 = vmatpush3.bf16.msra.mxu0 %v1350_v13 }
  0x28   : > { %1270 = vmatprep.subr.bf16.mxu0 %v1352_v17 }
  0x29   : > { %1243 = vmatpush3.bf16.msra.mxu1 %v1357_v21 }
  0x2a   : > { %1223 = vmatmul.mubr.msk.bf16.gmra.mrb[8].mxu0 %vm338_vm1, %v1341_v16  ;;  %1244 = vmatprep.subr.bf16.mxu1 %v1359_v25 }
  0x2b   : > { %1226 = vmatprep.mubr.msk.bf16.mxu0 %vm338_vm1, %v1342_v19  ;;  %1271 = vmatpush3.bf16.msra.mxu0 %v1352_v17 }
  0x2c   : > { %1272 = vmatprep.subr.bf16.mxu0 %v1354_v20 }
  0x2d   : > { %1245 = vmatpush3.bf16.msra.mxu1 %v1359_v25 }
  0x2f   : > { %1273 = vmatpush3.bf16.msra.mxu0 %v1354_v20 }
  0x30   : > { %1274 = vmatprep.subr.bf16.mxu0 %v1356_v22 }
  0x32   : > { %1227 = vmatmul.mubr.msk.bf16.gmra.mrb[12].mxu0 %vm338_vm1, %v1343_v23 }
  0x33   : > { %1275 = vmatpush3.bf16.msra.mxu0 %v1356_v22 }
  0x34   : > { %1276 = vmatprep.subr.bf16.mxu0 %v1358_v24 }
  0x37   : > { %1277 = vmatpush3.bf16.msra.mxu0 %v1358_v24 }
  0xed   : > { %v1216_v26 = vpop.f32.mrb[0].mxu0 }
  0xee   : > { %v401_v27 = vpop.f32.mrb[1].mxu0 }
  0xef   : > { %v1217_v28 = vpop.f32.mrb[2].mxu0 }
  0xf0   : > { %v465_v29 = vpack.c.bf16 %v1217_v28, %v1216_v26  ;;  %v404_v30 = vpop.f32.mrb[3].mxu0 }
  0xf1   : > { %v464_v31 = vpack.c.bf16 %v404_v30, %v401_v27 }
  0xf2   : > { %1164 = vst [vmem:[%s1589_s29 + $0x8] sm:$0xff] %v465_v29  }
  0xf3   : > { %1128 = vst [vmem:[%s1589_s29] sm:$0xff] %v464_v31   ;;  %1246 = vmatprep.mubr.bf16.mxu1 %v464_v31  ;;  %1278 = vmatprep.mubr.bf16.mxu0 %v464_v31 }
  0xf4   : > { %1247 = vmatmul.mubr.bf16.vlgmr.msra.gmra.mrb[0].mxu1 %v465_v29  ;;  %1279 = vmatmul.mubr.bf16.vlgmr.msra.gmra.mrb[16].mxu0 %v465_v29 }
  0xf5   : > { %v1220_v32 = vpop.f32.mrb[4].mxu0 }
  0xf6   : > { %v417_v33 = vpop.f32.mrb[5].mxu0 }
  0xf7   : > { %v1221_v34 = vpop.f32.mrb[6].mxu0 }
  0xf8   : > { %v467_v35 = vpack.c.bf16 %v1221_v34, %v1220_v32  ;;  %v420_v36 = vpop.f32.mrb[7].mxu0 }
  0xf9   : > { %v466_v37 = vpack.c.bf16 %v420_v36, %v417_v33 }
  0xfa   : > { %1166 = vst [vmem:[%s1589_s29 + $0x18] sm:$0xff] %v467_v35  }
  0xfb   : > { %1165 = vst [vmem:[%s1589_s29 + $0x10] sm:$0xff] %v466_v37   ;;  %1250 = vmatprep.mubr.bf16.mxu1 %v466_v37  ;;  %1282 = vmatprep.mubr.bf16.mxu0 %v466_v37 }
  0xfc   : > { %1251 = vmatmul.mubr.bf16.gmra.mrb[4].mxu1 %v467_v35  ;;  %1283 = vmatmul.mubr.bf16.gmra.mrb[20].mxu0 %v467_v35 }
  0xfd   : > { %v1224_v38 = vpop.f32.mrb[8].mxu0 }
  0xfe   : > { %v433_v39 = vpop.f32.mrb[9].mxu0 }
  0xff   : > { %v1225_v40 = vpop.f32.mrb[10].mxu0 }
 0x100   : > { %v469_v41 = vpack.c.bf16 %v1225_v40, %v1224_v38  ;;  %v436_v42 = vpop.f32.mrb[11].mxu0 }
 0x101   : > { %v468_v43 = vpack.c.bf16 %v436_v42, %v433_v39 }
 0x102   : > { %1168 = vst [vmem:[%s1589_s29 + $0x28] sm:$0xff] %v469_v41  }
 0x103   : > { %1167 = vst [vmem:[%s1589_s29 + $0x20] sm:$0xff] %v468_v43   ;;  %1254 = vmatprep.mubr.bf16.mxu1 %v468_v43  ;;  %1286 = vmatprep.mubr.bf16.mxu0 %v468_v43 }
 0x104   : > { %1255 = vmatmul.mubr.bf16.gmra.mrb[8].mxu1 %v469_v41  ;;  %1287 = vmatmul.mubr.bf16.gmra.mrb[24].mxu0 %v469_v41 }
 0x105   : > { %v1228_v44 = vpop.f32.mrb[12].mxu0 }
 0x106   : > { %v449_v45 = vpop.f32.mrb[13].mxu0 }
 0x107   : > { %v1229_v46 = vpop.f32.mrb[14].mxu0 }
 0x108   : > { %v471_v47 = vpack.c.bf16 %v1229_v46, %v1228_v44  ;;  %v452_v48 = vpop.f32.mrb[15].mxu0 }
 0x109   : > { %v470_v49 = vpack.c.bf16 %v452_v48, %v449_v45 }
 0x10a   : > { %1170 = vst [vmem:[%s1589_s29 + $0x38] sm:$0xff] %v471_v47  }
 0x10b   : > { %1169 = vst [vmem:[%s1589_s29 + $0x30] sm:$0xff] %v470_v49   ;;  %1258 = vmatprep.mubr.bf16.mxu1 %v470_v49  ;;  %1290 = vmatprep.mubr.bf16.mxu0 %v470_v49 }
 0x10c   : > { %1259 = vmatmul.mubr.bf16.gmra.mrb[12].mxu1 %v471_v47  ;;  %1291 = vmatmul.mubr.bf16.gmra.mrb[28].mxu0 %v471_v47 }
 0x10d   : > { %1373 = shalt.err (!%p1370_p3)
}
 0x10e   : > { %s1374_s19 = scalar_lea.hbm %s1604_s14, 1024  ;;  %s1378_s26 = scalar_lea.hbm %s1730_s4, 2048 }
 0x10f   : > { %p1375_p4 = scmp.ne.s32.totalorder %s1604_s14, %s1374_s19  ;;  %p1379_p9 = scmp.lt.u32.totalorder %s1604_s14, %s1730_s4 }
 0x110   : > { %p1380_p10 = scmp.lt.u32.totalorder %s1378_s26, %s1374_s19  ;;  %p1382_p12 = scmp.lt.u32.totalorder %s1374_s19, %s1604_s14 }
 0x111   : > { %p1376_p7 = pnand %p1375_p4, %p1500_p5 }
 0x112   : > { %p1381_p11 = por %p1380_p10, %p1379_p9 }
 0x113   : > { %p1377_p8 = pneg %p1376_p7 }
 0x114   : > { %p1383_p13 = por %p1382_p12, %p1381_p11 }
 0x116   : > { %p1384_p0 = pnand %p1383_p13, %p1377_p8 }
 0x118   : > { %1387 = shalt.err (!%p1384_p0)
}
 0x119   : > { %s1425_s12 = smov 64   ;;  %s1426_s13 = smov 4   ;;  %vm705_vm2 = vcmask 31744  }
 0x11a   : > { %1295 = dma.vmem_to_hbm [thread:$0]  (%p1500_p5), %s1606_s10, 1024, %s1604_s14, %s1610_s15, %s1425_s12, %s1425_s12, %s1426_s13  }
 0x11b   : > { %s1051_s16 = sshll.u32 %s1740_s11, 3 }
 0x11c   : > { %s1638_s18 = scalar_lea.vmem %s1731_s5, %s1051_s16  ;;  %s1643_s28 = scalar_lea.vmem %s1732_s6, %s1051_s16 }
 0x1c7   : > { %v1248_v50 = vpop.f32.mrb[0].mxu1  ;;  %v1280_v51 = vpop.f32.mrb[16].mxu0 }
 0x1c8   : > { %708 = vst.msk [vmem:[%s1638_s18 + $0x10] sm:$0xff] %vm705_vm2, %v1248_v50  ;;  %885 = vst.msk [vmem:[%s1643_s28 + $0x10] sm:$0xff] %vm705_vm2, %v1280_v51  ;;  %v642_v52 = vpop.f32.mrb[1].mxu1  ;;  %v820_v53 = vpop.f32.mrb[17].mxu0 }
 0x1c9   : > { %706 = vst.msk [vmem:[%s1638_s18] sm:$0xff] %vm705_vm2, %v642_v52  ;;  %883 = vst.msk [vmem:[%s1643_s28] sm:$0xff] %vm705_vm2, %v820_v53  ;;  %v1249_v54 = vpop.f32.mrb[2].mxu1  ;;  %v1281_v55 = vpop.f32.mrb[18].mxu0 }
 0x1ca   : > { %709 = vst.msk [vmem:[%s1638_s18 + $0x18] sm:$0xff] %vm705_vm2, %v1249_v54  ;;  %886 = vst.msk [vmem:[%s1643_s28 + $0x18] sm:$0xff] %vm705_vm2, %v1281_v55  ;;  %v645_v56 = vpop.f32.mrb[3].mxu1  ;;  %v823_v57 = vpop.f32.mrb[19].mxu0 }
 0x1cb   : > { %707 = vst.msk [vmem:[%s1638_s18 + $0x8] sm:$0xff] %vm705_vm2, %v645_v56  ;;  %884 = vst.msk [vmem:[%s1643_s28 + $0x8] sm:$0xff] %vm705_vm2, %v823_v57 }
 0x1cf   : > { %v1252_v58 = vpop.f32.mrb[4].mxu1  ;;  %v1284_v59 = vpop.f32.mrb[20].mxu0 }
 0x1d0   : > { %712 = vst.msk [vmem:[%s1638_s18 + $0x30] sm:$0xff] %vm705_vm2, %v1252_v58  ;;  %889 = vst.msk [vmem:[%s1643_s28 + $0x30] sm:$0xff] %vm705_vm2, %v1284_v59  ;;  %v658_v60 = vpop.f32.mrb[5].mxu1  ;;  %v836_v61 = vpop.f32.mrb[21].mxu0 }
 0x1d1   : > { %710 = vst.msk [vmem:[%s1638_s18 + $0x20] sm:$0xff] %vm705_vm2, %v658_v60  ;;  %887 = vst.msk [vmem:[%s1643_s28 + $0x20] sm:$0xff] %vm705_vm2, %v836_v61  ;;  %v1253_v62 = vpop.f32.mrb[6].mxu1  ;;  %v1285_v63 = vpop.f32.mrb[22].mxu0 }
 0x1d2   : > { %713 = vst.msk [vmem:[%s1638_s18 + $0x38] sm:$0xff] %vm705_vm2, %v1253_v62  ;;  %890 = vst.msk [vmem:[%s1643_s28 + $0x38] sm:$0xff] %vm705_vm2, %v1285_v63  ;;  %v661_v0 = vpop.f32.mrb[7].mxu1  ;;  %v839_v1 = vpop.f32.mrb[23].mxu0 }
 0x1d3   : > { %711 = vst.msk [vmem:[%s1638_s18 + $0x28] sm:$0xff] %vm705_vm2, %v661_v0  ;;  %888 = vst.msk [vmem:[%s1643_s28 + $0x28] sm:$0xff] %vm705_vm2, %v839_v1 }
 0x1d7   : > { %v1256_v2 = vpop.f32.mrb[8].mxu1  ;;  %v1288_v3 = vpop.f32.mrb[24].mxu0 }
 0x1d8   : > { %716 = vst.msk [vmem:[%s1638_s18 + $0x50] sm:$0xff] %vm705_vm2, %v1256_v2  ;;  %893 = vst.msk [vmem:[%s1643_s28 + $0x50] sm:$0xff] %vm705_vm2, %v1288_v3  ;;  %v674_v4 = vpop.f32.mrb[9].mxu1  ;;  %v852_v5 = vpop.f32.mrb[25].mxu0 }
 0x1d9   : > { %714 = vst.msk [vmem:[%s1638_s18 + $0x40] sm:$0xff] %vm705_vm2, %v674_v4  ;;  %891 = vst.msk [vmem:[%s1643_s28 + $0x40] sm:$0xff] %vm705_vm2, %v852_v5  ;;  %v1257_v6 = vpop.f32.mrb[10].mxu1  ;;  %v1289_v7 = vpop.f32.mrb[26].mxu0 }
 0x1da   : > { %717 = vst.msk [vmem:[%s1638_s18 + $0x58] sm:$0xff] %vm705_vm2, %v1257_v6  ;;  %894 = vst.msk [vmem:[%s1643_s28 + $0x58] sm:$0xff] %vm705_vm2, %v1289_v7  ;;  %v677_v8 = vpop.f32.mrb[11].mxu1  ;;  %v855_v9 = vpop.f32.mrb[27].mxu0 }
 0x1db   : > { %715 = vst.msk [vmem:[%s1638_s18 + $0x48] sm:$0xff] %vm705_vm2, %v677_v8  ;;  %892 = vst.msk [vmem:[%s1643_s28 + $0x48] sm:$0xff] %vm705_vm2, %v855_v9 }
 0x1df   : > { %v1260_v10 = vpop.f32.mrb[12].mxu1  ;;  %v1292_v11 = vpop.f32.mrb[28].mxu0 }
 0x1e0   : > { %720 = vst.msk [vmem:[%s1638_s18 + $0x70] sm:$0xff] %vm705_vm2, %v1260_v10  ;;  %897 = vst.msk [vmem:[%s1643_s28 + $0x70] sm:$0xff] %vm705_vm2, %v1292_v11  ;;  %v690_v12 = vpop.f32.mrb[13].mxu1  ;;  %v868_v13 = vpop.f32.mrb[29].mxu0 }
 0x1e1   : > { %718 = vst.msk [vmem:[%s1638_s18 + $0x60] sm:$0xff] %vm705_vm2, %v690_v12  ;;  %895 = vst.msk [vmem:[%s1643_s28 + $0x60] sm:$0xff] %vm705_vm2, %v868_v13  ;;  %v1261_v14 = vpop.f32.mrb[14].mxu1  ;;  %v1293_v15 = vpop.f32.mrb[30].mxu0 }
 0x1e2   : > { %721 = vst.msk [vmem:[%s1638_s18 + $0x78] sm:$0xff] %vm705_vm2, %v1261_v14  ;;  %898 = vst.msk [vmem:[%s1643_s28 + $0x78] sm:$0xff] %vm705_vm2, %v1293_v15  ;;  %v693_v16 = vpop.f32.mrb[15].mxu1  ;;  %v871_v17 = vpop.f32.mrb[31].mxu0 }
 0x1e3   : > { %719 = vst.msk [vmem:[%s1638_s18 + $0x68] sm:$0xff] %vm705_vm2, %v693_v16  ;;  %896 = vst.msk [vmem:[%s1643_s28 + $0x68] sm:$0xff] %vm705_vm2, %v871_v17 }
 0x1e4 PF: > { %p1301_p5 = scmp.ge.s32.totalorder %s1422_s24, 2  ;;  %s946_s7 = sand.u32 1, %s1410_s21  }
 0x1e5   : > { %s947_s11 = scalar_lea.sflag [#allocation3], %s946_s7 }
 0x1e6   : > { %p1298_p1 = pnand %p1301_p5, %p1504_p6 }
 0x1e8   : > { %1405 = dma.done.wait (!%p1298_p1), %s947_s11, 1024  }
 0x1e9   : > { %1407 = vsyncadd (!%p1298_p1), %s947_s11, 4294966272  ;;  %p17_p2 = scmp.ge.s32.totalorder %s1487_s27, 4   ;;  %s1735_s21 = smov %s1414_s22 }
 0x1ea   : > { %s1736_s22 = smov %s1418_s23  ;;  %s1737_s23 = smov %s1498_s30 }
 0x1eb   : > { %s1738_s24 = smov %s1487_s27  ;;  %19 = sbr.rel (!%p17_p2) target bundleno = 3 (0x3), region = 95 }
 0x1f2   :  { %968 = vsyncpa [#allocation3], 1 }
 0x1f3   :  { %970 = vsyncpa [#allocation3 + $0x1], 1 }

</bundles_post_ra>
